<compile_context>
chip_gen: v7x
topology: tpu7x:2x2x1
jax: 0.10.0
libtpu: 0.0.40
codegen_flags: <defaults>
</compile_context>

<pallas_src>
import jax
import jax.numpy as jnp
from jax.experimental import pallas as pl
from jax.experimental.pallas import tpu as pltpu


def _round_up(x, m):
    return ((x + m - 1) // m) * m


# ----------------------------- Pallas kernel -------------------------------


def mlp_fused_kernel(*refs):
    """Fused MLP forward for one batch tile.

    refs = (x_ref, w_0, ..., w_{L-1}, o_ref)
      x_ref : (TB, Fin_pad)   f32 batch tile (Fin padded to a multiple of 128)
      w_i   : (d_i, d_{i+1})  bf16 weights (first K-padded, last lane-padded)
      o_ref : (TB, Fout_pad)  f32 lane-dense output tile
    All layers chained in-register: bf16 dot (f32 acc) -> f32 ReLU -> ...
    """
    x_ref = refs[0]
    o_ref = refs[-1]
    w_refs = refs[1:-1]

    h = x_ref[...]                                   # f32 activations
    n_layers = len(w_refs)
    for i, w_ref in enumerate(w_refs):
        # bf16 MXU inputs, f32 accumulation via preferred_element_type.
        h = jnp.dot(h.astype(w_ref.dtype), w_ref[...],
                    preferred_element_type=jnp.float32)
        if i < n_layers - 1:                          # ReLU on hidden layers only
            h = jnp.maximum(h, 0.0)                   # stays on the f32 accumulator
    o_ref[...] = h.astype(o_ref.dtype)


# ------------------------------ JAX wrapper ---------------------------------


def mlp_forward(weights, x, out_features):
    """Single-pallas_call forward. `weights` are already padded/bf16."""
    B, Fin = x.shape
    fin_pad = weights[0].shape[0]                     # K already padded host-side
    fout_pad = weights[-1].shape[1]                   # N already lane-padded

    # --- batch tiling: MXU-shaped tiles, single step for small batches ------
    if B <= 256:
        tb = _round_up(B, 8)                          # one grid step, sublane-aligned
    else:
        tb = 256                                      # fills MXU rows for big B
    b_pad = _round_up(B, tb)
    grid = (b_pad // tb,)
    multi_step = grid[0] > 1

    # --- pad x rows/cols with zeros (contribute nothing to the dots) --------
    if (b_pad, fin_pad) != (B, Fin):
        x = jnp.pad(x, ((0, b_pad - B), (0, fin_pad - Fin)))

    # x streams per step; deeper buffering only pays off when multi-step.
    if multi_step:
        x_spec = pl.BlockSpec((tb, fin_pad), lambda i: (i, 0),
                              pipeline_mode=pl.Buffered(3))
    else:
        x_spec = pl.BlockSpec((tb, fin_pad), lambda i: (i, 0))
    in_specs = [x_spec]
    # Weights: same block every step -> resident in VMEM, no re-DMA.
    in_specs += [pl.BlockSpec(w.shape, lambda i: (0, 0)) for w in weights]

    flops = 2 * b_pad * sum(int(w.shape[0]) * int(w.shape[1]) for w in weights)
    bytes_accessed = (x.size * x.dtype.itemsize
                      + b_pad * fout_pad * 4
                      + sum(int(w.size) * w.dtype.itemsize for w in weights))
    cost = pl.CostEstimate(flops=flops, transcendentals=0,
                           bytes_accessed=bytes_accessed)

    out_padded = pl.pallas_call(
        mlp_fused_kernel,
        out_shape=jax.ShapeDtypeStruct((b_pad, fout_pad), jnp.float32),
        grid_spec=pltpu.PrefetchScalarGridSpec(
            num_scalar_prefetch=0,
            grid=grid,
            in_specs=in_specs,
            out_specs=pl.BlockSpec((tb, fout_pad), lambda i: (i, 0)),
        ),
        compiler_params=pltpu.CompilerParams(
            dimension_semantics=(("parallel",) if multi_step else ("arbitrary",))),
        cost_estimate=cost,
    )(x, *weights)

    # Consumers that can work on the lane-padded slab should take `out_padded`
    # directly; this thin slice exists only to match the module's (B, P) output.
    return out_padded[:B, :out_features]


# ----------------------------- parameter setup ------------------------------


def init_mlp_params(key, P=97, hidden=(512,), weight_multiplier=1.0,
                    mxu_dtype=jnp.bfloat16):
    """Xavier-normal weights, bias=False, matching MLP.init_weights().

    Weights are stored (in_features, out_features).  The first layer's input
    dim (2P=194) is zero-row-padded to 256 and the final layer's output dim
    (97) is zero-col-padded to 128 so the kernel sees clean (8,128)-aligned
    tiles.  Weights are cast to bf16 for native MXU throughput.
    """
    dims = [2 * P] + list(hidden) + [P]
    keys = jax.random.split(key, len(dims) - 1)

    weights = []
    for i in range(len(dims) - 1):
        fan_in, fan_out = dims[i], dims[i + 1]
        std = (2.0 / (fan_in + fan_out)) ** 0.5       # xavier_normal_
        w = std * jax.random.normal(keys[i], (fan_in, fan_out), jnp.float32)
        weights.append(weight_multiplier * w)

    fin, fin_pad = dims[0], _round_up(dims[0], 128)   # 194 -> 256
    if fin_pad != fin:
        weights[0] = jnp.pad(weights[0], ((0, fin_pad - fin), (0, 0)))

    fout, fout_pad = dims[-1], _round_up(dims[-1], 128)   # 97 -> 128
    if fout_pad != fout:
        weights[-1] = jnp.pad(weights[-1], ((0, 0), (0, fout_pad - fout)))

    weights = [w.astype(mxu_dtype) for w in weights]
    return weights, fout


# ---------------------------------- main -------------------------------------


if __name__ == "__main__":
    # Shapes consistent with MLP defaults: P=97 (input 2*P=194), hidden=[512],
    # bias=False, weight_multiplier=1.  Small batch of 16 -> single grid step.
    P = 97
    hidden = (512,)
    batch = 16

    key = jax.random.PRNGKey(0)
    pkey, xkey = jax.random.split(key)
    weights, out_features = init_mlp_params(pkey, P=P, hidden=hidden)
    x = jax.random.normal(xkey, (batch, 2 * P), jnp.float32)

    fwd = jax.jit(mlp_forward, static_argnums=(2,))
    out = jax.block_until_ready(fwd(weights, x, out_features))

    assert out.shape == (batch, P), out.shape
    assert out.dtype == jnp.float32

    # Pure-JAX reference using the same padded bf16 weights / f32 accumulation.
    fin_pad = weights[0].shape[0]
    h = jnp.pad(x, ((0, 0), (0, fin_pad - x.shape[1])))
    for i, w in enumerate(weights):
        h = jnp.dot(h.astype(w.dtype), w, preferred_element_type=jnp.float32)
        if i < len(weights) - 1:
            h = jnp.maximum(h, 0.0)
    ref = h[:, :P]
    assert jnp.allclose(out, ref, atol=1e-3, rtol=1e-3), \
        float(jnp.max(jnp.abs(out - ref)))

    # TODO(synk): optimizer / weight_decay from MLP.__init__ are training-time
    # state, not part of the forward pass; intentionally omitted.
    print("KERNEL_OK")
</pallas_src>

<mosaic_0001>
module attributes {stable_mosaic.version = 11 : i64} {
  func.func @mlp_fused_kernel(%arg0: i32, %arg1: memref<16x256xf32, #tpu.memory_space<vmem>>, %arg2: memref<256x512xbf16, #tpu.memory_space<vmem>>, %arg3: memref<512x128xbf16, #tpu.memory_space<vmem>>, %arg4: memref<16x128xf32, #tpu.memory_space<vmem>>) attributes {dimension_semantics = [#tpu.dimension_semantics<arbitrary>], iteration_bounds = array<i64: 1>, scalar_prefetch = 0 : i64, scratch_operands = 0 : i64, tpu.core_type = #tpu.core_type<tc>, window_params = [{transform_indices = @transform_0, window_bounds = array<i64: 16, 256>}, {pipeline_mode = #tpu.pipeline_mode<synchronous>, transform_indices = @transform_1, window_bounds = array<i64: 256, 512>}, {pipeline_mode = #tpu.pipeline_mode<synchronous>, transform_indices = @transform_2, window_bounds = array<i64: 512, 128>}, {transform_indices = @transform_3, window_bounds = array<i64: 16, 128>}]} {
    %c0 = arith.constant 0 : index
    %c0_0 = arith.constant 0 : index
    %0 = vector.load %arg1[%c0, %c0_0] : memref<16x256xf32, #tpu.memory_space<vmem>>, vector<16x256xf32>
    %1 = arith.truncf %0 : vector<16x256xf32> to vector<16x256xbf16>
    %c0_1 = arith.constant 0 : index
    %c0_2 = arith.constant 0 : index
    %2 = vector.load %arg2[%c0_1, %c0_2] : memref<256x512xbf16, #tpu.memory_space<vmem>>, vector<256x512xbf16>
    %cst = arith.constant dense<0.000000e+00> : vector<16x512xf32>
    %3 = tpu.matmul %1, %2, %cst {dimension_numbers = #tpu.dot_dimension_numbers<[1], [0], [0], [1], [0, 0, 1, 1], [], []>} : vector<16x256xbf16>, vector<256x512xbf16>, vector<16x512xf32> -> vector<16x512xf32>
    %cst_3 = arith.constant 0.000000e+00 : f32
    %4 = vector.broadcast %cst_3 : f32 to vector<16x512xf32>
    %5 = arith.maximumf %3, %4 : vector<16x512xf32>
    %6 = arith.truncf %5 : vector<16x512xf32> to vector<16x512xbf16>
    %c0_4 = arith.constant 0 : index
    %c0_5 = arith.constant 0 : index
    %7 = vector.load %arg3[%c0_4, %c0_5] : memref<512x128xbf16, #tpu.memory_space<vmem>>, vector<512x128xbf16>
    %cst_6 = arith.constant dense<0.000000e+00> : vector<16x128xf32>
    %8 = tpu.matmul %6, %7, %cst_6 {dimension_numbers = #tpu.dot_dimension_numbers<[1], [0], [0], [1], [0, 0, 1, 1], [], []>} : vector<16x512xbf16>, vector<512x128xbf16>, vector<16x128xf32> -> vector<16x128xf32>
    %c0_7 = arith.constant 0 : index
    %c0_8 = arith.constant 0 : index
    %9 = vector.load %arg4[%c0_7, %c0_8] : memref<16x128xf32, #tpu.memory_space<vmem>>, vector<16x128xf32>
    tpu.vector_store %arg4[%c0_7, %c0_8], %8 {strides = array<i32>} : memref<16x128xf32, #tpu.memory_space<vmem>>, vector<16x128xf32>,
    return
  }
  func.func @transform_0(%arg0: i32) -> (i32, i32) {
    %c0_i32 = arith.constant 0 : i32
    %c0_i32_0 = arith.constant 0 : i32
    return %arg0, %c0_i32 : i32, i32
  }
  func.func @transform_1(%arg0: i32) -> (i32, i32) {
    %c0_i32 = arith.constant 0 : i32
    %c0_i32_0 = arith.constant 0 : i32
    %c0_i32_1 = arith.constant 0 : i32
    return %c0_i32, %c0_i32_0 : i32, i32
  }
  func.func @transform_2(%arg0: i32) -> (i32, i32) {
    %c0_i32 = arith.constant 0 : i32
    %c0_i32_0 = arith.constant 0 : i32
    %c0_i32_1 = arith.constant 0 : i32
    return %c0_i32, %c0_i32_0 : i32, i32
  }
  func.func @transform_3(%arg0: i32) -> (i32, i32) {
    %c0_i32 = arith.constant 0 : i32
    %c0_i32_0 = arith.constant 0 : i32
    return %arg0, %c0_i32 : i32, i32
  }
}

</mosaic_0001>

<bundles_post_ra>
// kernel: mlp_forward.1
= control target key start
LH: loop header
LB: loop body
LE: loop exit
PB: predicated region body
PF: predicated region fallthrough
CT: control target
= control target key end

     0   :  { %8 = vsyncpa [#allocation3], 0  ;;  %s1316_s0 = inlined_call_operand.vmem [shape: f32[16,256], index: 0, kind: input, shape index: {}]   ;;  %s1317_s1 = inlined_call_operand.hbm [shape: bf16[256,512], index: 1, kind: input, shape index: {}]   ;;  %s1318_s2 = inlined_call_operand.hbm [shape: bf16[512,128], index: 2, kind: input, shape index: {}]   ;;  %s1319_s3 = inlined_call_operand.hbm [shape: f32[16,128], index: 3, kind: output, shape index: {}]  }
   0x1   :  { %9 = vsyncpa [#allocation6], 0 }
   0x2   :  { %10 = vsyncpa [#allocation4], 0  ;;  %s1239_s12 = smov [#allocation2]   ;;  %s1167_s16 = scalar_lea.hbm %s1317_s1, 8192 }
   0x3   :  { %s18_s13 = sshll.u32 %s1239_s12, 4  ;;  %p1168_p0 = scmp.ne.s32.totalorder %s1317_s1, %s1167_s16  ;;  %s19_s13 = int_to_ptr.vmem [resolvable:$true] %s18_s13 }
   0x4   :  { %p1171_p1 = scmp.lt.u32.totalorder %s1167_s16, %s1317_s1 }
   0x6   :  { %p1173_p2 = pnand %p1171_p1, %p1168_p0 }
   0x8   :  { %1176 = shalt.err (!%p1173_p2)
}
   0x9   :  { %s1177_s21 = scalar_lea.vmem %s19_s13, 8192  ;;  %p1182_p4 = scmp.lt.s32.totalorder %s19_s13, %s19_s13 }
   0xa   :  { %p1178_p3 = scmp.ne.s32.totalorder %s19_s13, %s1177_s21  ;;  %p1183_p5 = scmp.lt.s32.totalorder %s1177_s21, %s1177_s21 }
   0xc   :  { %p1184_p6 = por %p1183_p5, %p1182_p4 }
   0xe   :  { %p1185_p7 = pnand %p1184_p6, %p1178_p3 }
  0x10   :  { %1188 = shalt.err (!%p1185_p7)
}
  0x11   :  { %s1240_s22 = smov 256   ;;  %s1241_s23 = smov 16  }
  0x12   :  { %24 = dma.hbm_to_vmem [thread:$0]  %s1317_s1, 8192, %s19_s13, [#allocation3], %s1240_s22, %s1240_s22, %s1241_s23  }
  0x13   :  { %s1242_s26 = smov [#allocation5]   ;;  %s1189_s30 = scalar_lea.hbm %s1318_s2, 4096 }
  0x14   :  { %s30_s27 = sshll.u32 %s1242_s26, 4  ;;  %p1190_p8 = scmp.ne.s32.totalorder %s1318_s2, %s1189_s30  ;;  %s31_s27 = int_to_ptr.vmem [resolvable:$true] %s30_s27 }
  0x15   :  { %p1193_p9 = scmp.lt.u32.totalorder %s1189_s30, %s1318_s2 }
  0x17   :  { %p1195_p10 = pnand %p1193_p9, %p1190_p8 }
  0x19   :  { %1198 = shalt.err (!%p1195_p10)
}
  0x1a   :  { %s1199_s8 = scalar_lea.vmem %s31_s27, 4096  ;;  %p1204_p12 = scmp.lt.s32.totalorder %s31_s27, %s31_s27 }
  0x1b   :  { %p1200_p11 = scmp.ne.s32.totalorder %s31_s27, %s1199_s8  ;;  %p1205_p13 = scmp.lt.s32.totalorder %s1199_s8, %s1199_s8 }
  0x1d   :  { %p1206_p0 = por %p1205_p13, %p1204_p12 }
  0x1f   :  { %p1207_p1 = pnand %p1206_p0, %p1200_p11 }
  0x21   :  { %1210 = shalt.err (!%p1207_p1)
}
  0x22   :  { %s1243_s1 = smov 64   ;;  %s1244_s9 = smov 4  }
  0x23   :  { %36 = dma.hbm_to_vmem [thread:$0]  %s1318_s2, 4096, %s31_s27, [#allocation6], %s1243_s1, %s1243_s1, %s1244_s9  }
  0x24   :  { %1233 = dma.done.wait [#allocation3], 8192  }
  0x25   :  { %1234 = vsyncadd [#allocation3], 4294959104 }
  0x26   :  { %1235 = dma.done.wait [#allocation6], 4096  }
  0x27   :  { %1236 = vsyncadd [#allocation6], 4294963200  ;;  %v1039_v0 = vld [vmem:[#allocation2 + $0x4] ss:$16 sps:$4 sm:$0xff]   ;;  %v1041_v1 = vld [vmem:[#allocation2 + $0xc] ss:$16 sps:$4 sm:$0xff]  }
  0x28   :  { %434 = vmatprep.subr.bf16.mxu0 %v1039_v0  ;;  %v1043_v2 = vld [vmem:[#allocation2] ss:$16 sps:$4 sm:$0xff]   ;;  %v1044_v3 = vld [vmem:[#allocation2 + $0x8] ss:$16 sps:$4 sm:$0xff]   ;;  %477 = vmatprep.subr.bf16.mxu1 %v1041_v1  ;;  %v1045_v4 = vld [vmem:[#allocation2 + $0x24] ss:$16 sps:$4 sm:$0xff]  }
  0x29   :  { %435 = vmatpush1.bf16.msra.mxu0 %v1043_v2  ;;  %478 = vmatpush1.bf16.msra.mxu1 %v1044_v3  ;;  %v1047_v5 = vld [vmem:[#allocation2 + $0x2c] ss:$16 sps:$4 sm:$0xff]   ;;  %v1049_v6 = vld [vmem:[#allocation2 + $0x20] ss:$16 sps:$4 sm:$0xff]   ;;  %v1050_v7 = vld [vmem:[#allocation2 + $0x28] ss:$16 sps:$4 sm:$0xff]  }
  0x2a   :  { %436 = vmatprep.subr.bf16.mxu0 %v1045_v4  ;;  %479 = vmatprep.subr.bf16.mxu1 %v1047_v5  ;;  %v1051_v8 = vld [vmem:[#allocation2 + $0x44] ss:$16 sps:$4 sm:$0xff]   ;;  %v1053_v9 = vld [vmem:[#allocation2 + $0x4c] ss:$16 sps:$4 sm:$0xff]   ;;  %v1055_v10 = vld [vmem:[#allocation2 + $0x40] ss:$16 sps:$4 sm:$0xff]  }
  0x2b   :  { %v1056_v11 = vld [vmem:[#allocation2 + $0x48] ss:$16 sps:$4 sm:$0xff]   ;;  %v1057_v12 = vld [vmem:[#allocation2 + $0x64] ss:$16 sps:$4 sm:$0xff]   ;;  %v1059_v13 = vld [vmem:[#allocation2 + $0x6c] ss:$16 sps:$4 sm:$0xff]  }
  0x2c   :  { %v1061_v14 = vld [vmem:[#allocation2 + $0x60] ss:$16 sps:$4 sm:$0xff]   ;;  %v1062_v15 = vld [vmem:[#allocation2 + $0x68] ss:$16 sps:$4 sm:$0xff]   ;;  %v1063_v16 = vld [vmem:[#allocation2 + $0x84] ss:$16 sps:$4 sm:$0xff]  }
  0x2d   :  { %437 = vmatpush1.bf16.msra.mxu0 %v1049_v6  ;;  %480 = vmatpush1.bf16.msra.mxu1 %v1050_v7  ;;  %v1065_v17 = vld [vmem:[#allocation2 + $0x8c] ss:$16 sps:$4 sm:$0xff]   ;;  %v1067_v18 = vld [vmem:[#allocation2 + $0x80] ss:$16 sps:$4 sm:$0xff]   ;;  %v1068_v19 = vld [vmem:[#allocation2 + $0x88] ss:$16 sps:$4 sm:$0xff]  }
  0x2e   :  { %438 = vmatprep.subr.bf16.mxu0 %v1051_v8  ;;  %481 = vmatprep.subr.bf16.mxu1 %v1053_v9  ;;  %v1069_v20 = vld [vmem:[#allocation2 + $0xa4] ss:$16 sps:$4 sm:$0xff]   ;;  %v1071_v21 = vld [vmem:[#allocation2 + $0xac] ss:$16 sps:$4 sm:$0xff]   ;;  %v1073_v22 = vld [vmem:[#allocation2 + $0xa0] ss:$16 sps:$4 sm:$0xff]  }
  0x2f   :  { %v1074_v23 = vld [vmem:[#allocation2 + $0xa8] ss:$16 sps:$4 sm:$0xff]   ;;  %v1075_v24 = vld [vmem:[#allocation2 + $0xc4] ss:$16 sps:$4 sm:$0xff]   ;;  %v1077_v25 = vld [vmem:[#allocation2 + $0xcc] ss:$16 sps:$4 sm:$0xff]  }
  0x30   :  { %v1079_v26 = vld [vmem:[#allocation2 + $0xc0] ss:$16 sps:$4 sm:$0xff]   ;;  %v1080_v27 = vld [vmem:[#allocation2 + $0xc8] ss:$16 sps:$4 sm:$0xff]   ;;  %v1081_v28 = vld [vmem:[#allocation2 + $0xe4] ss:$16 sps:$4 sm:$0xff]  }
  0x31   :  { %439 = vmatpush1.bf16.msra.mxu0 %v1055_v10  ;;  %482 = vmatpush1.bf16.msra.mxu1 %v1056_v11  ;;  %v1083_v29 = vld [vmem:[#allocation2 + $0xec] ss:$16 sps:$4 sm:$0xff]   ;;  %v1085_v30 = vld [vmem:[#allocation2 + $0xe0] ss:$16 sps:$4 sm:$0xff]   ;;  %v1086_v31 = vld [vmem:[#allocation2 + $0xe8] ss:$16 sps:$4 sm:$0xff]  }
  0x32   :  { %440 = vmatprep.subr.bf16.mxu0 %v1057_v12  ;;  %483 = vmatprep.subr.bf16.mxu1 %v1059_v13  ;;  %v1087_v32 = vld [vmem:[#allocation2 + $0x104] ss:$16 sps:$4 sm:$0xff]   ;;  %v1089_v33 = vld [vmem:[#allocation2 + $0x10c] ss:$16 sps:$4 sm:$0xff]   ;;  %v1091_v34 = vld [vmem:[#allocation2 + $0x100] ss:$16 sps:$4 sm:$0xff]  }
  0x33   :  { %v1092_v35 = vld [vmem:[#allocation2 + $0x108] ss:$16 sps:$4 sm:$0xff]   ;;  %v1093_v36 = vld [vmem:[#allocation2 + $0x124] ss:$16 sps:$4 sm:$0xff]   ;;  %v1095_v37 = vld [vmem:[#allocation2 + $0x12c] ss:$16 sps:$4 sm:$0xff]  }
  0x34   :  { %v1097_v38 = vld [vmem:[#allocation2 + $0x120] ss:$16 sps:$4 sm:$0xff]   ;;  %v1098_v39 = vld [vmem:[#allocation2 + $0x128] ss:$16 sps:$4 sm:$0xff]   ;;  %v1099_v40 = vld [vmem:[#allocation2 + $0x144] ss:$16 sps:$4 sm:$0xff]  }
  0x35   :  { %441 = vmatpush1.bf16.msra.mxu0 %v1061_v14  ;;  %484 = vmatpush1.bf16.msra.mxu1 %v1062_v15  ;;  %v1101_v41 = vld [vmem:[#allocation2 + $0x14c] ss:$16 sps:$4 sm:$0xff]   ;;  %v1103_v42 = vld [vmem:[#allocation2 + $0x140] ss:$16 sps:$4 sm:$0xff]   ;;  %v1104_v43 = vld [vmem:[#allocation2 + $0x148] ss:$16 sps:$4 sm:$0xff]  }
  0x36   :  { %442 = vmatprep.subr.bf16.mxu0 %v1063_v16  ;;  %485 = vmatprep.subr.bf16.mxu1 %v1065_v17  ;;  %v1105_v44 = vld [vmem:[#allocation2 + $0x164] ss:$16 sps:$4 sm:$0xff]   ;;  %v1107_v45 = vld [vmem:[#allocation2 + $0x16c] ss:$16 sps:$4 sm:$0xff]   ;;  %v1109_v47 = vld [vmem:[#allocation2 + $0x160] ss:$16 sps:$4 sm:$0xff]  }
  0x37   :  { %v45_v46 = vld [vmem:[%s1316_s0 + $0x8] sm:$0xff]  ;;  %v47_v49 = vld [vmem:[%s1316_s0 + $0x18] sm:$0xff]  ;;  %v1111_v50 = vld [vmem:[#allocation2 + $0x184] ss:$16 sps:$4 sm:$0xff]  }
  0x38   :  { %v1110_v48 = vld [vmem:[#allocation2 + $0x168] ss:$16 sps:$4 sm:$0xff]   ;;  %v49_v51 = vpack.c.bf16 %v47_v49, %v45_v46  ;;  %v1113_v52 = vld [vmem:[#allocation2 + $0x18c] ss:$16 sps:$4 sm:$0xff]   ;;  %v1115_v53 = vld [vmem:[#allocation2 + $0x180] ss:$16 sps:$4 sm:$0xff]  }
  0x39   :  { %443 = vmatpush1.bf16.msra.mxu0 %v1067_v18  ;;  %486 = vmatpush1.bf16.msra.mxu1 %v1068_v19  ;;  %v1116_v54 = vld [vmem:[#allocation2 + $0x188] ss:$16 sps:$4 sm:$0xff]   ;;  %v1117_v55 = vld [vmem:[#allocation2 + $0x1a4] ss:$16 sps:$4 sm:$0xff]   ;;  %v1119_v56 = vld [vmem:[#allocation2 + $0x1ac] ss:$16 sps:$4 sm:$0xff]  }
  0x3a   :  { %444 = vmatprep.subr.bf16.mxu0 %v1069_v20  ;;  %487 = vmatprep.subr.bf16.mxu1 %v1071_v21  ;;  %v1121_v57 = vld [vmem:[#allocation2 + $0x1a0] ss:$16 sps:$4 sm:$0xff]   ;;  %v1122_v58 = vld [vmem:[#allocation2 + $0x1a8] ss:$16 sps:$4 sm:$0xff]   ;;  %v1123_v59 = vld [vmem:[#allocation2 + $0x1c4] ss:$16 sps:$4 sm:$0xff]  }
  0x3b   :  { %466 = vmatprep.mubr.bf16.mxu0 %v49_v51  ;;  %509 = vmatprep.mubr.bf16.mxu1 %v49_v51  ;;  %v1125_v60 = vld [vmem:[#allocation2 + $0x1cc] ss:$16 sps:$4 sm:$0xff]   ;;  %v1127_v61 = vld [vmem:[#allocation2 + $0x1c0] ss:$16 sps:$4 sm:$0xff]   ;;  %v1128_v62 = vld [vmem:[#allocation2 + $0x1c8] ss:$16 sps:$4 sm:$0xff]  }
  0x3c   :  { %v1129_v63 = vld [vmem:[#allocation2 + $0x1e4] ss:$16 sps:$4 sm:$0xff]   ;;  %v1131_v0 = vld [vmem:[#allocation2 + $0x1ec] ss:$16 sps:$4 sm:$0xff]   ;;  %v1133_v1 = vld [vmem:[#allocation2 + $0x1e0] ss:$16 sps:$4 sm:$0xff]  }
  0x3d   :  { %445 = vmatpush1.bf16.msra.mxu0 %v1073_v22  ;;  %488 = vmatpush1.bf16.msra.mxu1 %v1074_v23  ;;  %v1134_v2 = vld [vmem:[#allocation2 + $0x1e8] ss:$16 sps:$4 sm:$0xff]   ;;  %v44_v3 = vld [vmem:[%s1316_s0] sm:$0xff]  ;;  %v46_v4 = vld [vmem:[%s1316_s0 + $0x10] sm:$0xff]  ;;  %s1245_s0 = smov [#allocation7]  }
  0x3e   :  { %446 = vmatprep.subr.bf16.mxu0 %v1075_v24  ;;  %489 = vmatprep.subr.bf16.mxu1 %v1077_v25  ;;  %v1135_v5 = vld [vmem:[#allocation5 + $0x40] sm:$0xff]   ;;  %v48_v8 = vpack.c.bf16 %v46_v4, %v44_v3  ;;  %v1139_v10 = vld [vmem:[#allocation5 + $0x48] sm:$0xff]   ;;  %v1143_v14 = vld [vmem:[#allocation5 + $0x50] sm:$0xff]   ;;  %s877_s19 = sshll.u32 %s1245_s0, 4  ;;  %s878_s19 = int_to_ptr.vmem [resolvable:$true] %s877_s19 }
  0x3f   :  { %v1136_v6 = vld [vmem:[#allocation5 + $0xc0] sm:$0xff]   ;;  %v1140_v11 = vld [vmem:[#allocation5 + $0xc8] sm:$0xff]   ;;  %v1144_v15 = vld [vmem:[#allocation5 + $0xd0] sm:$0xff]   ;;  %s1211_s20 = scalar_lea.vmem %s878_s19, 256  ;;  %p1216_p3 = scmp.lt.s32.totalorder %s878_s19, %s878_s19 }
  0x40   :  { %v1137_v7 = vld [vmem:[#allocation5] sm:$0xff]   ;;  %v1141_v12 = vld [vmem:[#allocation5 + $0x8] sm:$0xff]   ;;  %v1145_v16 = vld [vmem:[#allocation5 + $0x10] sm:$0xff]   ;;  %p1212_p2 = scmp.ne.s32.totalorder %s878_s19, %s1211_s20  ;;  %p1217_p4 = scmp.lt.s32.totalorder %s1211_s20, %s1211_s20 }
  0x41   :  { %447 = vmatpush1.bf16.msra.mxu0 %v1079_v26  ;;  %490 = vmatpush1.bf16.msra.mxu1 %v1080_v27  ;;  %v1138_v9 = vld [vmem:[#allocation5 + $0x80] sm:$0xff]   ;;  %v1142_v13 = vld [vmem:[#allocation5 + $0x88] sm:$0xff]   ;;  %v1146_v17 = vld [vmem:[#allocation5 + $0x90] sm:$0xff]  }
  0x42   :  { %448 = vmatprep.subr.bf16.mxu0 %v1081_v28  ;;  %491 = vmatprep.subr.bf16.mxu1 %v1083_v29  ;;  %v1147_v18 = vld [vmem:[#allocation5 + $0x58] sm:$0xff]   ;;  %v1151_v22 = vld [vmem:[#allocation5 + $0x60] sm:$0xff]   ;;  %v1155_v26 = vld [vmem:[#allocation5 + $0x68] sm:$0xff]   ;;  %p1218_p5 = por %p1217_p4, %p1216_p3 }
  0x43   :  { %v1148_v19 = vld [vmem:[#allocation5 + $0xd8] sm:$0xff]   ;;  %v1152_v23 = vld [vmem:[#allocation5 + $0xe0] sm:$0xff]   ;;  %v1156_v27 = vld [vmem:[#allocation5 + $0xe8] sm:$0xff]  }
  0x44   :  { %v1149_v20 = vld [vmem:[#allocation5 + $0x18] sm:$0xff]   ;;  %v1153_v24 = vld [vmem:[#allocation5 + $0x20] sm:$0xff]   ;;  %v1157_v28 = vld [vmem:[#allocation5 + $0x28] sm:$0xff]   ;;  %p1219_p6 = pnand %p1218_p5, %p1212_p2 }
  0x45   :  { %449 = vmatpush1.bf16.msra.mxu0 %v1085_v30  ;;  %492 = vmatpush1.bf16.msra.mxu1 %v1086_v31  ;;  %v1150_v21 = vld [vmem:[#allocation5 + $0x98] sm:$0xff]   ;;  %v1154_v25 = vld [vmem:[#allocation5 + $0xa0] sm:$0xff]   ;;  %v1158_v29 = vld [vmem:[#allocation5 + $0xa8] sm:$0xff]  }
  0x46   :  { %450 = vmatprep.subr.bf16.mxu0 %v1087_v32  ;;  %493 = vmatprep.subr.bf16.mxu1 %v1089_v33  ;;  %v1159_v30 = vld [vmem:[#allocation5 + $0x70] sm:$0xff]  }
  0x47   :  { %v1160_v31 = vld [vmem:[#allocation5 + $0xf0] sm:$0xff]  }
  0x48   :  { %v1161_v32 = vld [vmem:[#allocation5 + $0x30] sm:$0xff]  }
  0x49   :  { %451 = vmatpush1.bf16.msra.mxu0 %v1091_v34  ;;  %494 = vmatpush1.bf16.msra.mxu1 %v1092_v35  ;;  %v1162_v33 = vld [vmem:[#allocation5 + $0xb0] sm:$0xff]   ;;  %v1163_v34 = vld [vmem:[#allocation5 + $0x78] sm:$0xff]  }
  0x4a   :  { %452 = vmatprep.subr.bf16.mxu0 %v1093_v36  ;;  %495 = vmatprep.subr.bf16.mxu1 %v1095_v37  ;;  %v1164_v35 = vld [vmem:[#allocation5 + $0xf8] sm:$0xff]  }
  0x4b   :  { %v1165_v36 = vld [vmem:[#allocation5 + $0x38] sm:$0xff]  }
  0x4c   :  { %v1166_v37 = vld [vmem:[#allocation5 + $0xb8] sm:$0xff]  }
  0x4d   :  { %453 = vmatpush1.bf16.msra.mxu0 %v1097_v38  ;;  %496 = vmatpush1.bf16.msra.mxu1 %v1098_v39 }
  0x4e   :  { %454 = vmatprep.subr.bf16.mxu0 %v1099_v40  ;;  %497 = vmatprep.subr.bf16.mxu1 %v1101_v41 }
  0x51   :  { %455 = vmatpush1.bf16.msra.mxu0 %v1103_v42  ;;  %498 = vmatpush1.bf16.msra.mxu1 %v1104_v43 }
  0x52   :  { %456 = vmatprep.subr.bf16.mxu0 %v1105_v44  ;;  %499 = vmatprep.subr.bf16.mxu1 %v1107_v45 }
  0x55   :  { %457 = vmatpush1.bf16.msra.mxu0 %v1109_v47  ;;  %500 = vmatpush1.bf16.msra.mxu1 %v1110_v48 }
  0x56   :  { %458 = vmatprep.subr.bf16.mxu0 %v1111_v50  ;;  %501 = vmatprep.subr.bf16.mxu1 %v1113_v52 }
  0x59   :  { %459 = vmatpush1.bf16.msra.mxu0 %v1115_v53  ;;  %502 = vmatpush1.bf16.msra.mxu1 %v1116_v54 }
  0x5a   :  { %460 = vmatprep.subr.bf16.mxu0 %v1117_v55  ;;  %503 = vmatprep.subr.bf16.mxu1 %v1119_v56 }
  0x5d   :  { %461 = vmatpush1.bf16.msra.mxu0 %v1121_v57  ;;  %504 = vmatpush1.bf16.msra.mxu1 %v1122_v58 }
  0x5e   :  { %462 = vmatprep.subr.bf16.mxu0 %v1123_v59  ;;  %505 = vmatprep.subr.bf16.mxu1 %v1125_v60 }
  0x61   :  { %463 = vmatpush1.bf16.msra.mxu0 %v1127_v61  ;;  %506 = vmatpush1.bf16.msra.mxu1 %v1128_v62 }
  0x62   :  { %464 = vmatprep.subr.bf16.mxu0 %v1129_v63  ;;  %507 = vmatprep.subr.bf16.mxu1 %v1131_v0 }
  0x65   :  { %465 = vmatpush1.bf16.msra.mxu0 %v1133_v1  ;;  %508 = vmatpush1.bf16.msra.mxu1 %v1134_v2 }
  0x66   :  { %986 = vmatprep.subr.bf16.mxu0 %v1135_v5  ;;  %1008 = vmatprep.subr.bf16.mxu1 %v1136_v6 }
  0x68   :  { %467 = vmatmul.mubr.bf16.vlgmr.msra.gmra.mrb[0].mxu0 %v48_v8  ;;  %510 = vmatmul.mubr.bf16.vlgmr.msra.gmra.mrb[0].mxu1 %v48_v8 }
  0x69   :  { %987 = vmatpush3.bf16.msra.mxu0 %v1137_v7  ;;  %1009 = vmatpush3.bf16.msra.mxu1 %v1138_v9 }
  0x6a   :  { %988 = vmatprep.subr.bf16.mxu0 %v1139_v10  ;;  %1010 = vmatprep.subr.bf16.mxu1 %v1140_v11 }
  0x6d   :  { %989 = vmatpush3.bf16.msra.mxu0 %v1141_v12  ;;  %1011 = vmatpush3.bf16.msra.mxu1 %v1142_v13 }
  0x6e   :  { %990 = vmatprep.subr.bf16.mxu0 %v1143_v14  ;;  %1012 = vmatprep.subr.bf16.mxu1 %v1144_v15 }
  0x71   :  { %991 = vmatpush3.bf16.msra.mxu0 %v1145_v16  ;;  %1013 = vmatpush3.bf16.msra.mxu1 %v1146_v17 }
  0x72   :  { %992 = vmatprep.subr.bf16.mxu0 %v1147_v18  ;;  %1014 = vmatprep.subr.bf16.mxu1 %v1148_v19 }
  0x75   :  { %993 = vmatpush3.bf16.msra.mxu0 %v1149_v20  ;;  %1015 = vmatpush3.bf16.msra.mxu1 %v1150_v21 }
  0x76   :  { %994 = vmatprep.subr.bf16.mxu0 %v1151_v22  ;;  %1016 = vmatprep.subr.bf16.mxu1 %v1152_v23 }
  0x79   :  { %995 = vmatpush3.bf16.msra.mxu0 %v1153_v24  ;;  %1017 = vmatpush3.bf16.msra.mxu1 %v1154_v25 }
  0x7a   :  { %996 = vmatprep.subr.bf16.mxu0 %v1155_v26  ;;  %1018 = vmatprep.subr.bf16.mxu1 %v1156_v27 }
  0x7d   :  { %997 = vmatpush3.bf16.msra.mxu0 %v1157_v28  ;;  %1019 = vmatpush3.bf16.msra.mxu1 %v1158_v29 }
  0x7e   :  { %998 = vmatprep.subr.bf16.mxu0 %v1159_v30  ;;  %1020 = vmatprep.subr.bf16.mxu1 %v1160_v31 }
  0x81   :  { %999 = vmatpush3.bf16.msra.mxu0 %v1161_v32  ;;  %1021 = vmatpush3.bf16.msra.mxu1 %v1162_v33 }
  0x82   :  { %1000 = vmatprep.subr.bf16.mxu0 %v1163_v34  ;;  %1022 = vmatprep.subr.bf16.mxu1 %v1164_v35 }
  0x85   :  { %1001 = vmatpush3.bf16.msra.mxu0 %v1165_v36  ;;  %1023 = vmatpush3.bf16.msra.mxu1 %v1166_v37 }
 0x13b   :  { %v468_v38 = vpop.f32.mrb[0].mxu0  ;;  %v511_v39 = vpop.f32.mrb[0].mxu1 }
 0x13c   :  { %v470_v40 = vpop.f32.mrb[1].mxu0  ;;  %v513_v41 = vpop.f32.mrb[1].mxu1  ;;  %v520_v44 = vmax.f32 %v468_v38, 0.0  ;;  %v522_v45 = vmax.f32 %v511_v39, 0.0 }
 0x13d   :  { %v472_v42 = vpop.f32.mrb[2].mxu0  ;;  %v515_v43 = vpop.f32.mrb[2].mxu1  ;;  %v521_v50 = vmax.f32 %v470_v40, 0.0  ;;  %v523_v51 = vmax.f32 %v513_v41, 0.0 }
 0x13e   :  { %v524_v46 = vmax.f32 %v472_v42, 0.0  ;;  %v526_v47 = vmax.f32 %v515_v43, 0.0  ;;  %v474_v48 = vpop.f32.mrb[3].mxu0  ;;  %v517_v49 = vpop.f32.mrb[3].mxu1 }
 0x13f   :  { %v525_v52 = vmax.f32 %v474_v48, 0.0  ;;  %v527_v53 = vmax.f32 %v517_v49, 0.0 }
 0x140   :  { %v528_v54 = vpack.c.bf16 %v524_v46, %v520_v44  ;;  %v530_v55 = vpack.c.bf16 %v526_v47, %v522_v45 }
 0x141   :  { %v529_v56 = vpack.c.bf16 %v525_v52, %v521_v50  ;;  %v531_v57 = vpack.c.bf16 %v527_v53, %v523_v51 }
 0x143   :  { %820 = vmatprep.mubr.bf16.mxu0 %v529_v56  ;;  %861 = vmatprep.mubr.bf16.mxu1 %v531_v57 }
 0x144   :  { %821 = vmatmul.mubr.bf16.vlgmr.msra.gmra.mrb[4].mxu0 %v528_v54  ;;  %862 = vmatmul.mubr.bf16.vlgmr.msra.gmra.mrb[4].mxu1 %v530_v55 }
 0x217   :  { %v1002_v58 = vpop.f32.mrb[4].mxu0  ;;  %v1024_v59 = vpop.f32.mrb[4].mxu1 }
 0x218   :  { %v1003_v60 = vpop.f32.mrb[5].mxu0  ;;  %v1025_v61 = vpop.f32.mrb[5].mxu1 }
 0x219   :  { %v1004_v62 = vadd.f32 %v1003_v60, %v1002_v58  ;;  %v1026_v63 = vadd.f32 %v1025_v61, %v1024_v59  ;;  %v1005_v0 = vpop.f32.mrb[6].mxu0  ;;  %v1027_v1 = vpop.f32.mrb[6].mxu1 }
 0x21a   :  { %v1006_v2 = vpop.f32.mrb[7].mxu0  ;;  %v1028_v3 = vpop.f32.mrb[7].mxu1 }
 0x21b   :  { %v864_v4 = vadd.f32 %v1026_v63, %v1004_v62  ;;  %v1007_v5 = vadd.f32 %v1006_v2, %v1005_v0  ;;  %v1029_v6 = vadd.f32 %v1028_v3, %v1027_v1 }
 0x21d   :  { %870 = vst [vmem:[#allocation7] sm:$0xff] %v864_v4  ;;  %v867_v7 = vadd.f32 %v1029_v6, %v1007_v5 }
 0x21f   :  { %871 = vst [vmem:[#allocation7 + $0x8] sm:$0xff] %v867_v7 }
 0x220   :  { %1222 = shalt.err (!%p1219_p6)
}
 0x221   :  { %s1223_s23 = scalar_lea.hbm %s1319_s3, 256 }
 0x222   :  { %p1224_p7 = scmp.ne.s32.totalorder %s1319_s3, %s1223_s23  ;;  %p1227_p8 = scmp.lt.u32.totalorder %s1223_s23, %s1319_s3 }
 0x224   :  { %p1229_p9 = pnand %p1227_p8, %p1224_p7 }
 0x226   :  { %1232 = shalt.err (!%p1229_p9)
}
 0x227   :  { %s1246_s28 = smov 128   ;;  %s1247_s29 = smov 8  }
 0x228   :  { %883 = dma.vmem_to_hbm [thread:$0]  %s878_s19, 256, %s1319_s3, [#allocation4], %s1246_s28, %s1246_s28, %s1247_s29  }
 0x229   :  { %1237 = dma.done.wait [#allocation4], 256  }
 0x22a   :  { %1238 = vsyncadd [#allocation4], 4294967040 }
 0x22b   :  { %887 = vsyncpa [#allocation3], 1 }
 0x22c   :  { %888 = vsyncpa [#allocation6], 1 }
 0x22d   :  { %889 = vsyncpa [#allocation4], 1 }

</bundles_post_ra>
